<compile_context>
chip_gen: v7x
topology: tpu7x:2x2x1
jax: 0.10.0
libtpu: 0.0.40
codegen_flags: <defaults>
</compile_context>

<pallas_src>
import jax
import jax.numpy as jnp
from jax.experimental import pallas as pl
from jax.experimental.pallas import tpu as pltpu


# ----------------------------------------------------------------------------
# Pallas kernel: one (batch, HW-tile) block of   SiLU( W_x @ x + W_c' @ coords' )
# where coords' has an extra row of ones and W_c' an extra bias column.
# ----------------------------------------------------------------------------
def _coordconv_kernel(x_ref, caug_ref, wm_ref, wca_ref, o_ref):
  # x_ref:    (1, C, hw_tile)   bf16   input channels, HW on the lane axis
  # caug_ref: (K+1, hw_tile)    bf16   [xx; yy; (rr); ones]
  # wm_ref:   (O, C)            bf16   BN-folded 1x1 conv weight (input chans)
  # wca_ref:  (O, K+1)          bf16   BN-folded weight (coord chans) | bias
  # o_ref:    (1, O, hw_tile)   f32
  z = jnp.dot(wm_ref[...], x_ref[0], preferred_element_type=jnp.float32)
  z = z + jnp.dot(wca_ref[...], caug_ref[...], preferred_element_type=jnp.float32)
  o_ref[0] = (z * jax.nn.sigmoid(z)).astype(o_ref.dtype)   # SiLU in f32


# ----------------------------------------------------------------------------
# Helpers
# ----------------------------------------------------------------------------
def _make_coords(H, W, with_r):
  """(K, H*W) coordinate channels, matching AddCoords (xx over H, yy over W)."""
  h = jnp.arange(H, dtype=jnp.float32)
  w = jnp.arange(W, dtype=jnp.float32)
  xx = jnp.broadcast_to((2.0 * h / (H - 1) - 1.0)[:, None], (H, W))
  yy = jnp.broadcast_to((2.0 * w / (W - 1) - 1.0)[None, :], (H, W))
  chans = [xx.reshape(1, H * W), yy.reshape(1, H * W)]
  if with_r:
    rr = jnp.sqrt((xx - 0.5) ** 2 + (yy - 0.5) ** 2)
    chans.append(rr.reshape(1, H * W))
  return jnp.concatenate(chans, axis=0)


def _pick_hw_tile(HW, C, O, Kp1, budget_bytes=8 << 20):
  """Largest HW tile (multiple of 128 dividing HW) within a VMEM byte budget."""
  # double-buffered bf16 x + coords, double-buffered f32 out, + one f32 acc
  per_elem = 4 * C + 4 * Kp1 + 12 * O
  cap = max(128, budget_bytes // per_elem)
  if HW <= cap:
    return HW
  t = (cap // 128) * 128
  while t >= 128:
    if HW % t == 0:
      return t
    t -= 128
  return HW  # TODO(synk): pad HW when no 128-multiple divisor fits the budget


# ----------------------------------------------------------------------------
# Wrapper
# ----------------------------------------------------------------------------
def coordconv(x_nchw, params, *, with_r=False, hw_tile=None):
  B, C, H, W = x_nchw.shape
  HW = H * W
  O = params["w_main"].shape[0]

  coords = _make_coords(H, W, with_r)                       # (K, HW) f32
  K = coords.shape[0]
  ones = jnp.ones((1, HW), jnp.float32)
  coords_aug = jnp.concatenate([coords, ones], axis=0).astype(jnp.bfloat16)

  # bf16 storage/DMA; MXU accumulates in f32.
  x = x_nchw.reshape(B, C, HW).astype(jnp.bfloat16)          # reshape only, no transpose
  wm = params["w_main"].astype(jnp.bfloat16)                 # (O, C)
  wca = jnp.concatenate(                                     # (O, K+1): coord wts | bias
      [params["w_coord"], params["bias"][:, None]], axis=1).astype(jnp.bfloat16)

  if hw_tile is None:
    hw_tile = _pick_hw_tile(HW, C, O, K + 1)
  assert HW % hw_tile == 0
  n_t = HW // hw_tile

  out = pl.pallas_call(
      _coordconv_kernel,
      out_shape=jax.ShapeDtypeStruct((B, O, HW), x_nchw.dtype),
      grid=(B, n_t),
      in_specs=[
          pl.BlockSpec((1, C, hw_tile), lambda b, t: (b, 0, t)),
          pl.BlockSpec((K + 1, hw_tile), lambda b, t: (0, t)),
          pl.BlockSpec((O, C), lambda b, t: (0, 0)),
          pl.BlockSpec((O, K + 1), lambda b, t: (0, 0)),
      ],
      out_specs=pl.BlockSpec((1, O, hw_tile), lambda b, t: (b, 0, t)),
      compiler_params=pltpu.CompilerParams(
          dimension_semantics=("parallel", "parallel"),
          vmem_limit_bytes=48 * 1024 * 1024,
      ),
  )(x, coords_aug, wm, wca)

  return out.reshape(B, O, H, W)


# ----------------------------------------------------------------------------
# Parameters (deterministic synthetic), BN(eval) folded into the 1x1 conv.
# ----------------------------------------------------------------------------
def make_params(key, c_in, c_out, with_r=False):
  K = 3 if with_r else 2
  c_tot = c_in + K
  ks = jax.random.split(key, 5)
  f32 = jnp.float32
  eps = 1e-5

  w = jax.random.normal(ks[0], (c_out, c_tot), f32) / jnp.sqrt(jnp.asarray(c_tot, f32))
  gamma = 1.0 + 0.1 * jax.random.normal(ks[1], (c_out,), f32)
  beta = 0.1 * jax.random.normal(ks[2], (c_out,), f32)
  rm = 0.1 * jax.random.normal(ks[3], (c_out,), f32)
  rv = jax.random.uniform(ks[4], (c_out,), f32, 0.5, 1.5)

  s = gamma / jnp.sqrt(rv + eps)
  wf = w * s[:, None]
  bias = beta - rm * s
  return dict(
      w_raw=w, gamma=gamma, beta=beta, rm=rm, rv=rv,
      w_main=wf[:, :c_in], w_coord=wf[:, c_in:], bias=bias,
  )


# ----------------------------------------------------------------------------
# References
# ----------------------------------------------------------------------------
def reference_raw(x, p, with_r=False):
  """Faithful f32 CoordConv: AddCoords -> 1x1 conv (no bias) -> BN(eval) -> SiLU."""
  B, C, H, W = x.shape
  eps = 1e-5
  coords = _make_coords(H, W, with_r)
  K = coords.shape[0]
  xcat = jnp.concatenate(
      [x, jnp.broadcast_to(coords.reshape(1, K, H, W), (B, K, H, W))], axis=1)
  z = jnp.einsum("oc,bchw->bohw", p["w_raw"], xcat)
  bc = lambda v: v[None, :, None, None]
  z = (z - bc(p["rm"])) / jnp.sqrt(bc(p["rv"]) + eps)
  z = z * bc(p["gamma"]) + bc(p["beta"])
  return z * jax.nn.sigmoid(z)


def reference_folded(x_bcn, coords_kn, wm, wc, bias):
  """Folded-parameter reference on the (B, C, HW) layout, all f32."""
  z = (jnp.einsum("oc,bcn->bon", wm, x_bcn)
       + jnp.einsum("ok,kn->on", wc, coords_kn)[None]
       + bias[None, :, None])
  return z * jax.nn.sigmoid(z)


# ----------------------------------------------------------------------------
if __name__ == "__main__":
  B, C_in, H, W = 2, 4, 16, 16
  C_out = 8
  with_r = False

  key = jax.random.PRNGKey(0)
  kx, kp = jax.random.split(key)
  x = jax.random.normal(kx, (B, C_in, H, W), jnp.float32)
  params = make_params(kp, C_in, C_out, with_r=with_r)

  out = coordconv(x, params, with_r=with_r)
  out = jax.block_until_ready(out)
  assert out.shape == (B, C_out, H, W)

  HW = H * W
  coords = _make_coords(H, W, with_r)

  # 1) BN folding is exact (pure-JAX vs pure-JAX, f32).
  ref_raw = reference_raw(x, params, with_r=with_r)
  ref_fold = reference_folded(
      x.reshape(B, C_in, HW), coords,
      params["w_main"], params["w_coord"], params["bias"]).reshape(B, C_out, H, W)
  err_fold = float(jnp.max(jnp.abs(ref_fold - ref_raw)))
  assert jnp.allclose(ref_fold, ref_raw, atol=1e-4, rtol=1e-4), err_fold

  # 2) Pallas kernel matches the folded reference evaluated on the same
  #    bf16-quantised operands it consumes (MXU bf16 inputs, f32 accumulation).
  q = lambda a: a.astype(jnp.bfloat16).astype(jnp.float32)
  ref_q = reference_folded(
      q(x.reshape(B, C_in, HW)), q(coords),
      q(params["w_main"]), q(params["w_coord"]), q(params["bias"])
  ).reshape(B, C_out, H, W)
  err_k = float(jnp.max(jnp.abs(out - ref_q)))
  assert jnp.allclose(out, ref_q, atol=1e-3, rtol=1e-3), err_k

  print("KERNEL_OK")
</pallas_src>

<mosaic_0001>
module attributes {stable_mosaic.version = 11 : i64} {
  func.func @_coordconv_kernel(%arg0: i32, %arg1: i32, %arg2: memref<1x4x256xbf16, #tpu.memory_space<vmem>>, %arg3: memref<3x256xbf16, #tpu.memory_space<vmem>>, %arg4: memref<8x4xbf16, #tpu.memory_space<vmem>>, %arg5: memref<8x3xbf16, #tpu.memory_space<vmem>>, %arg6: memref<1x8x256xf32, #tpu.memory_space<vmem>>) attributes {dimension_semantics = [#tpu.dimension_semantics<parallel>, #tpu.dimension_semantics<parallel>], iteration_bounds = array<i64: 2, 1>, scalar_prefetch = 0 : i64, scratch_operands = 0 : i64, tpu.core_type = #tpu.core_type<tc>, window_params = [{transform_indices = @transform_0, window_bounds = array<i64: 1, 4, 256>}, {transform_indices = @transform_1, window_bounds = array<i64: 3, 256>}, {pipeline_mode = #tpu.pipeline_mode<synchronous>, transform_indices = @transform_2, window_bounds = array<i64: 8, 4>}, {pipeline_mode = #tpu.pipeline_mode<synchronous>, transform_indices = @transform_3, window_bounds = array<i64: 8, 3>}, {transform_indices = @transform_4, window_bounds = array<i64: 1, 8, 256>}]} {
    %c0 = arith.constant 0 : index
    %c0_0 = arith.constant 0 : index
    %0 = vector.load %arg4[%c0, %c0_0] : memref<8x4xbf16, #tpu.memory_space<vmem>>, vector<8x4xbf16>
    %c0_1 = arith.constant 0 : index
    %c0_2 = arith.constant 0 : index
    %c0_3 = arith.constant 0 : index
    %1 = vector.load %arg2[%c0_1, %c0_2, %c0_3] : memref<1x4x256xbf16, #tpu.memory_space<vmem>>, vector<1x4x256xbf16>
    %2 = vector.shape_cast %1 : vector<1x4x256xbf16> to vector<4x256xbf16>
    %cst = arith.constant dense<0.000000e+00> : vector<8x256xf32>
    %3 = tpu.matmul %0, %2, %cst {dimension_numbers = #tpu.dot_dimension_numbers<[1], [0], [0], [1], [0, 0, 1, 1], [], []>} : vector<8x4xbf16>, vector<4x256xbf16>, vector<8x256xf32> -> vector<8x256xf32>
    %c0_4 = arith.constant 0 : index
    %c0_5 = arith.constant 0 : index
    %4 = vector.load %arg5[%c0_4, %c0_5] : memref<8x3xbf16, #tpu.memory_space<vmem>>, vector<8x3xbf16>
    %c0_6 = arith.constant 0 : index
    %c0_7 = arith.constant 0 : index
    %5 = vector.load %arg3[%c0_6, %c0_7] : memref<3x256xbf16, #tpu.memory_space<vmem>>, vector<3x256xbf16>
    %cst_8 = arith.constant dense<0.000000e+00> : vector<8x256xf32>
    %6 = tpu.matmul %4, %5, %cst_8 {dimension_numbers = #tpu.dot_dimension_numbers<[1], [0], [0], [1], [0, 0, 1, 1], [], []>} : vector<8x3xbf16>, vector<3x256xbf16>, vector<8x256xf32> -> vector<8x256xf32>
    %7 = arith.addf %3, %6 : vector<8x256xf32>
    %8 = arith.negf %7 : vector<8x256xf32>
    %9 = math.exp %8 : vector<8x256xf32>
    %cst_9 = arith.constant 1.000000e+00 : f32
    %10 = vector.broadcast %cst_9 : f32 to vector<8x256xf32>
    %11 = arith.addf %10, %9 : vector<8x256xf32>
    %12 = arith.divf %10, %11 : vector<8x256xf32>
    %13 = arith.mulf %7, %12 : vector<8x256xf32>
    %c0_10 = arith.constant 0 : index
    %c0_11 = arith.constant 0 : index
    %c0_12 = arith.constant 0 : index
    %14 = vector.load %arg6[%c0_10, %c0_11, %c0_12] : memref<1x8x256xf32, #tpu.memory_space<vmem>>, vector<1x8x256xf32>
    %15 = vector.shape_cast %14 : vector<1x8x256xf32> to vector<8x256xf32>
    %16 = vector.shape_cast %13 : vector<8x256xf32> to vector<1x8x256xf32>
    tpu.vector_store %arg6[%c0_10, %c0_11, %c0_12], %16 {strides = array<i32>} : memref<1x8x256xf32, #tpu.memory_space<vmem>>, vector<1x8x256xf32>,
    return
  }
  func.func @transform_0(%arg0: i32, %arg1: i32) -> (i32, i32, i32) {
    %c0_i32 = arith.constant 0 : i32
    %c0_i32_0 = arith.constant 0 : i32
    return %arg0, %c0_i32, %arg1 : i32, i32, i32
  }
  func.func @transform_1(%arg0: i32, %arg1: i32) -> (i32, i32) {
    %c0_i32 = arith.constant 0 : i32
    %c0_i32_0 = arith.constant 0 : i32
    return %c0_i32, %arg1 : i32, i32
  }
  func.func @transform_2(%arg0: i32, %arg1: i32) -> (i32, i32) {
    %c0_i32 = arith.constant 0 : i32
    %c0_i32_0 = arith.constant 0 : i32
    %c0_i32_1 = arith.constant 0 : i32
    return %c0_i32, %c0_i32_0 : i32, i32
  }
  func.func @transform_3(%arg0: i32, %arg1: i32) -> (i32, i32) {
    %c0_i32 = arith.constant 0 : i32
    %c0_i32_0 = arith.constant 0 : i32
    %c0_i32_1 = arith.constant 0 : i32
    return %c0_i32, %c0_i32_0 : i32, i32
  }
  func.func @transform_4(%arg0: i32, %arg1: i32) -> (i32, i32, i32) {
    %c0_i32 = arith.constant 0 : i32
    %c0_i32_0 = arith.constant 0 : i32
    return %arg0, %c0_i32, %arg1 : i32, i32, i32
  }
}

</mosaic_0001>

<bundles_post_ra>
// kernel: tpu_custom_call.1
= control target key start
LH: loop header
LB: loop body
LE: loop exit
PB: predicated region body
PF: predicated region fallthrough
CT: control target
= control target key end

     0   :  { %9 = vsyncpa [#allocation3], 0  ;;  %s824_s0 = inlined_call_operand.vmem [shape: bf16[2,4,256], index: 0, kind: input, shape index: {}]   ;;  %s825_s1 = inlined_call_operand.vmem [shape: bf16[3,256], index: 1, kind: input, shape index: {}]   ;;  %s826_s2 = inlined_call_operand.vmem [shape: bf16[8,4], index: 2, kind: input, shape index: {}]   ;;  %s827_s3 = inlined_call_operand.vmem [shape: bf16[8,3], index: 3, kind: input, shape index: {}]   ;;  %s828_s4 = inlined_call_operand.hbm [shape: f32[2,8,256], index: 4, kind: output, shape index: {}]  }
   0x1   :  { %11 = vsyncpa [#allocation3 + $0x1], 0  ;;  %s700_s15 = smov 0   ;;  %s702_s16 = smov 0  }
   0x2   :  { %s704_s17 = smov 0   ;;  %s706_s18 = smov 0  }
   0x3   :  { %s708_s19 = smov 0   ;;  %s710_s20 = smov 0  }
   0x4 LB: > { %s502_s21 = sadd.s32 4294967295, %s670_s20   ;;  %s503_s22 = sadd.s32 4294967294, %s670_s20   ;;  %s670_s20 = sphi %s710_s20, %s17_s20   ;;  %s666_s19 = sphi %s708_s19, %s835_s19   ;;  %s662_s18 = sphi %s706_s18, %s834_s18   ;;  %s658_s17 = sphi %s704_s17, %s833_s17   ;;  %s654_s16 = sphi %s702_s16, %s832_s16   ;;  %s650_s15 = sphi %s700_s15, %s831_s15  }
   0x5   : > { %s29_s23 = sadd.s32 1, %s666_s19  ;;  %s134_s24 = sadd.s32 1, %s658_s17 }
   0x6   : > { %p31_p0 = scmp.ge.s32.totalorder %s29_s23, 2  ;;  %p144_p1 = scmp.ne.s32.totalorder %s658_s17, %s654_s16 }
   0x7   : > { %p145_p2 = scmp.eq.s32.totalorder %s502_s21, 1  ;;  %p150_p3 = scmp.ne.s32.totalorder %s654_s16, %s650_s15 }
   0x8   : > { %s837_s23 = smov (%p31_p0, %s29_s23), 0  ;;  %p151_p5 = scmp.eq.s32.totalorder %s503_s22, 1 }
   0x9   : > { %p740_p4 = por %p145_p2, %p144_p1  ;;  %s129_s26 = ssub.s32 %s666_s19, %s837_s23 }
   0xa   : > { %p507_p6 = scmp.ge.s32.totalorder %s670_s20, 1  ;;  %p132_p7 = scmp.eq.s32.totalorder %s129_s26, 0 }
   0xb   : > { %p747_p8 = por %p151_p5, %p150_p3  ;;  %p197_p9 = scmp.lt.s32.totalorder %s670_s20, 3 }
   0xc   : > { %s753_s28 = scalar_select %p132_p7, %s658_s17, %s134_s24  }
   0xd   : > { %p198_p10 = pnand %p507_p6, %p197_p9 }
   0xe   : > { %v511_v0 = vld.sshfl [vmem:[%s825_s1] sm:$0x33 pattern:$0x76325410] (!%p198_p10)  ;;  %vm267_vm0 = vcmask (!%p198_p10), 1040384   ;;  %vm268_vm1 = vcmask (!%p198_p10), 1041408  }
   0xf   : > { %201 = sbr.rel (%p198_p10) target bundleno = 290 (0x122), region = 36  ;;  %v262_v1 = vcombine.high (!%p198_p10), %v511_v0, %v511_v0  ;;  %p233_p11 = scmp.lt.s32.totalorder (!%p198_p10), %s662_s18, 1  ;;  %v672_v2 = vmov (!%p198_p10), 65535   ;;  %v673_v4 = vmov (!%p198_p10), 0   ;;  %v252_v8 = vld [vmem:[%s827_s3] sm:$0xf] (!%p198_p10) }
  0x10   : > { %v269_v3 = vsel (!%p198_p10), %vm267_vm0, 4294967295, %v672_v2  ;;  %309 = vmatprep.mubr.bf16.mxu1 (!%p198_p10), %v673_v4  ;;  %369 = vmatprep.mubr.bf16.mxu0 (!%p198_p10), %v673_v4  ;;  %vm263_vm2 = vcmask (!%p198_p10), 23552   ;;  %v250_v12 = vld [vmem:[%s826_s2] sm:$0xf] (!%p198_p10)  ;;  %vm327_vm3 = vcmask (!%p198_p10), 31744   ;;  %s229_s14 = sand.u32 (!%p198_p10), 1, %s654_s16  }
  0x11   : > { %v270_v5 = vsel (!%p198_p10), %vm268_vm1, %v269_v3, 0  ;;  %s508_s21 = sshll.u32 (!%p198_p10), %s229_s14, 4  ;;  %s524_s22 = sshll.u32 (!%p198_p10), %s662_s18, 8 }
  0x12   : > { %v275_v6 = vand.u32 (!%p198_p10), %v270_v5, %v262_v1  ;;  %v272_v7 = vand.u32 (!%p198_p10), %v511_v0, %v270_v5  ;;  %s231_s24 = scalar_lea.vmem (!%p198_p10), [#allocation2], %s508_s21  ;;  %s674_s7 = smov (!%p198_p10), [#allocation2]  }
  0x13   : > { %s411_s26 = sshll.u32 (!%p198_p10), %s231_s24, 4  ;;  %s596_s8 = sshll.u32 (!%p198_p10), %s674_s7, 4  ;;  %s779_s26 = int_to_ptr.vmem [resolvable:$true] %s411_s26  ;;  %s597_s8 = int_to_ptr.vmem [resolvable:$false] %s596_s8 }
  0x14   : > { %277 = vmatprep.subr.bf16.mxu1 (!%p198_p10), %v275_v6  ;;  %p599_p1 = scmp.lt.s32.totalorder (!%p198_p10), %s779_s26, %s597_s8 }
  0x15   : > { %278 = vmatpush1.bf16.msra.mxu1 (!%p198_p10), %v272_v7 }
  0x16   : > { %s234_s5 = scalar_select %p233_p11, %s662_s18, 1 }
  0x17   : > { %s592_s18 = scalar_lea.vmem %s779_s26, 256 }
  0x18   : > { %s523_s6 = sshll.u32 %s234_s5, 2  ;;  %512 = vmatmul.mubr.msk.bf16.vlgmr.msra.gmra.mrb[0].mxu1 %vm263_vm2, %v252_v8  ;;  %s777_s5 = scalar_lea.hbm %s828_s4, %s524_s22 }
  0x19   : > { %s240_s9 = scalar_lea.vmem %s824_s0, %s523_s6  ;;  %s395_s6 = scalar_lea.sflag [#allocation3], %s229_s14 }
  0x1a   : > { %v513_v9 = vld.sshfl [vmem:[%s240_s9] sm:$0x33 pattern:$0x76325410]  ;;  %p593_p12 = scmp.ne.s32.totalorder %s779_s26, %s592_s18  ;;  %s598_s9 = scalar_lea.vmem %s597_s8, 512 }
  0x1b   : > { %v326_v10 = vcombine.high %v513_v9, %v513_v9  ;;  %v332_v11 = vsel %vm268_vm1, %v513_v9, 0  ;;  %p600_p2 = scmp.lt.s32.totalorder %s598_s9, %s592_s18 }
  0x1c   : > { %p594_p13 = pnand %p593_p12, %p740_p4 }
  0x1d   : > { %514 = vmatprep.subr.msk.bf16.mxu0 %vm268_vm1, %v326_v10  ;;  %p601_p3 = por %p600_p2, %p599_p1 }
  0x1e   : > { %338 = vmatpush1.bf16.msra.mxu0 %v332_v11  ;;  %p595_p0 = pneg %p594_p13 }
  0x20   : > { %p602_p5 = pnand %p601_p3, %p595_p0 }
  0x21   : > { %515 = vmatmul.mubr.msk.bf16.vlgmr.msra.gmra.mrb[0].mxu0 %vm327_vm3, %v250_v12 }
  0xeb   : > { %v311_v13 = vpop.f32.mrb[0].mxu1 }
  0xec   : > { %v313_v14 = vpop.f32.mrb[1].mxu1 }
  0xed   : > { %v315_v15 = vpop.f32.mrb[2].mxu1 }
  0xee   : > { %v316_v16 = vpop.f32.mrb[3].mxu1 }
  0xf4   : > { %v371_v17 = vpop.f32.mrb[0].mxu0 }
  0xf5   : > { %v372_v18 = vadd.f32 %v371_v17, %v311_v13  ;;  %v373_v19 = vpop.f32.mrb[1].mxu0 }
  0xf6   : > { %v374_v20 = vadd.f32 %v373_v19, %v313_v14  ;;  %v375_v21 = vpop.f32.mrb[2].mxu0 }
  0xf7   : > { %v516_v22 = vmul.f32 -1.442695, %v372_v18  ;;  %v376_v23 = vpop.f32.mrb[3].mxu0 }
  0xf8   : > { %v517_v24 = vmul.f32 -1.442695, %v374_v20 }
  0xf9   : > { %584 = vpow2.f32 %v516_v22 }
  0xfa   : > { %586 = vpow2.f32 %v517_v24 }
 0x103   : > { %v585_v25 = vpop.eup %584 }
 0x104   : > { %v587_v26 = vpop.eup %586  ;;  %v384_v27 = vadd.f32 1.0, %v585_v25 }
 0x105   : > { %v385_v28 = vadd.f32 1.0, %v587_v26 }
 0x106   : > { %588 = vrcp.f32 %v384_v27 }
 0x107   : > { %590 = vrcp.f32 %v385_v28 }
 0x110   : > { %v589_v29 = vpop.eup %588 }
 0x111   : > { %v591_v30 = vpop.eup %590  ;;  %v390_v31 = vmul.f32 %v589_v29, %v372_v18 }
 0x112   : > { %v391_v32 = vmul.f32 %v591_v30, %v374_v20 }
 0x113   : > { %392 = vst [vmem:[%s231_s24] sm:$0xff] %v390_v31 }
 0x114   : > { %393 = vst [vmem:[%s231_s24 + $0x8] sm:$0xff] %v391_v32 }
 0x115   : > { %605 = shalt.err (!%p602_p5)
}
 0x116   : > { %s606_s10 = scalar_lea.hbm %s777_s5, 256  ;;  %s610_s13 = scalar_lea.hbm %s828_s4, 512 }
 0x117   : > { %p607_p6 = scmp.ne.s32.totalorder %s777_s5, %s606_s10  ;;  %p611_p10 = scmp.lt.u32.totalorder %s777_s5, %s828_s4 }
 0x118   : > { %p612_p11 = scmp.lt.u32.totalorder %s610_s13, %s606_s10  ;;  %p614_p13 = scmp.lt.u32.totalorder %s606_s10, %s777_s5 }
 0x119   : > { %p608_p7 = pnand %p607_p6, %p740_p4 }
 0x11a   : > { %p613_p12 = por %p612_p11, %p611_p10 }
 0x11b   : > { %p609_p9 = pneg %p608_p7 }
 0x11c   : > { %p615_p0 = por %p614_p13, %p613_p12 }
 0x11e   : > { %p616_p1 = pnand %p615_p0, %p609_p9 }
 0x120   : > { %619 = shalt.err (!%p616_p1)
}
 0x121   : > { %527 = dma.vmem_to_hbm [thread:$0]  (%p740_p4), %s779_s26, 256, %s777_s5, %s395_s6  }
 0x122 PF: > { %p533_p2 = scmp.ge.s32.totalorder %s670_s20, 2  ;;  %s423_s22 = sand.u32 1, %s650_s15  }
 0x123   : > { %s424_s24 = scalar_lea.sflag [#allocation3], %s423_s22 }
 0x124   : > { %p530_p3 = pnand %p533_p2, %p747_p8 }
 0x126   : > { %645 = dma.done.wait (!%p530_p3), %s424_s24, 256  }
 0x127   : > { %647 = vsyncadd (!%p530_p3), %s424_s24, 4294967040  ;;  %s17_s20 = sadd.s32 1, %s670_s20   ;;  %s831_s15 = smov %s654_s16 }
 0x128   : > { %p14_p5 = scmp.ge.s32.totalorder %s17_s20, 4   ;;  %s832_s16 = smov %s658_s17 }
 0x129   : > { %s833_s17 = smov %s753_s28  ;;  %s834_s18 = smov %s666_s19 }
 0x12a   : > { %s835_s19 = smov %s837_s23  ;;  %16 = sbr.rel (!%p14_p5) target bundleno = 4 (0x4), region = 74 }
 0x131   :  { %429 = vsyncpa [#allocation3], 1 }
 0x132   :  { %431 = vsyncpa [#allocation3 + $0x1], 1 }

</bundles_post_ra>
